<compile_context>
chip_gen: v7x
topology: tpu7x:2x2x1
jax: 0.10.0
libtpu: 0.0.40
codegen_flags: <defaults>
</compile_context>

<pallas_src>
import functools
import math

import jax
import jax.numpy as jnp
from jax.experimental import pallas as pl
from jax.experimental.pallas import tpu as pltpu

_LANES = 128
_TARGET_BLOCK_BYTES = 4 * 1024 * 1024   # ~4 MiB per pipelined input buffer
_NAN_BIAS = 1 << 20                      # > any realistic bin count
_MISS = 1 << 22                          # sentinel for "not the max"


def _cdiv(a, b):
    return -(-a // b)


def _round_up(x, m):
    return _cdiv(x, m) * m


def _vmem_limit_bytes():
    """Scoped-VMEM limit: ~3/4 of physical VMEM, capped at 64 MiB.

    -> 64 MiB on v5e/v6e (128 MiB physical), ~48 MiB on v7x (64 MiB physical).
    """
    cap = 128 * 1024 * 1024
    try:
        cap = int(pltpu.get_tpu_info().vmem_capacity_bytes)
    except Exception:  # info query unavailable (e.g. interpret mode)
        pass
    return min(3 * cap // 4, 64 * 1024 * 1024)


def _argmax_bins_kernel(x_ref, o_ref, *, min_rating, bin_size):
    """x_ref: (ct, n_bins, 128) block — bins on sublanes, rows on lanes.

    o_ref: (ct, 128) float32 = min_rating + argmax_over_bins * bin_size.
    """
    x = x_ref[...]
    idx = jax.lax.broadcasted_iota(jnp.int32, x.shape, dimension=1)
    if jnp.issubdtype(x_ref.dtype, jnp.floating):
        isnan = x != x
        # torch.argmax: a NaN wins and the FIRST NaN index is returned.  Map
        # NaN -> +inf for the max and bias its candidate index negative so it
        # also beats genuine +inf entries on the index-min below.
        v = jnp.where(isnan, jnp.asarray(jnp.inf, x.dtype), x)
        idx = jnp.where(isnan, idx - _NAN_BIAS, idx)
    else:
        v = x
    maxv = jnp.max(v, axis=1, keepdims=True)          # sublane reduction
    cand = jnp.where(v == maxv, idx, _MISS)           # first occurrence wins
    best = jnp.min(cand, axis=1)                      # (ct, 128) int32
    best = jnp.where(best < 0, best + _NAN_BIAS, best)  # undo NaN bias
    o_ref[...] = (jnp.float32(min_rating)
                  + best.astype(jnp.float32) * jnp.float32(bin_size))


def _argmax_bins_call(xt, n, min_rating, bin_size, block_bytes):
    chunks = xt.shape[0]
    itemsize = jnp.dtype(xt.dtype).itemsize
    if chunks <= 8:
        ct = chunks                       # single full block; out dim == full
    else:
        # TODO(synk): for very large bin counts (8*n*128*itemsize >> VMEM
        # budget) add a second "arbitrary" grid axis over bins with a running
        # (max, argmax) accumulator; bin counts for this module are small.
        per_row = n * _LANES * itemsize
        ct = max(8, (block_bytes // per_row) // 8 * 8)
        # Keep >=2 grid steps so the single "parallel" axis feeds both v7x
        # TensorCores (and never exceed the array extent).
        ct = min(ct, _round_up(_cdiv(chunks, 2), 8))
    grid = (_cdiv(chunks, ct),)

    kernel = functools.partial(_argmax_bins_kernel,
                               min_rating=float(min_rating),
                               bin_size=float(bin_size))
    cost = pl.CostEstimate(
        flops=2 * chunks * _LANES * n,
        transcendentals=0,
        bytes_accessed=chunks * _LANES * n * itemsize + chunks * _LANES * 4)

    return pl.pallas_call(
        kernel,
        out_shape=jax.ShapeDtypeStruct((chunks, _LANES), jnp.float32),
        grid_spec=pltpu.PrefetchScalarGridSpec(
            num_scalar_prefetch=0,
            grid=grid,
            in_specs=[pl.BlockSpec((ct, n, _LANES), lambda i: (i, 0, 0))],
            out_specs=pl.BlockSpec((ct, _LANES), lambda i: (i, 0)),
        ),
        compiler_params=pltpu.CompilerParams(
            dimension_semantics=("parallel",),
            vmem_limit_bytes=_vmem_limit_bytes()),
        cost_estimate=cost,
    )(xt)


def beta_bins_mode(inputs, bin_size=1.0, min_rating=1.0, max_rating=5.0, *,
                   block_bytes=_TARGET_BLOCK_BYTES):
    """Pallas TPU implementation of BetaBinsMode.forward.

    inputs: (..., N) array; returns float32 array of shape (...,):
      min_rating + argmax(inputs, axis=-1) * bin_size
    """
    del max_rating  # unused by the forward pass (matches the PyTorch module)
    inputs = jnp.asarray(inputs)
    lead_shape = inputs.shape[:-1]
    n = inputs.shape[-1]
    m = int(math.prod(lead_shape)) if lead_shape else 1
    if m == 0:
        return jnp.zeros(lead_shape, jnp.float32)

    x2d = inputs.reshape(m, n)
    m_pad = _round_up(m, _LANES)
    if m_pad != m:
        x2d = jnp.pad(x2d, ((0, m_pad - m), (0, 0)))
    chunks = m_pad // _LANES
    # (m_pad, n) -> (chunks, 128, n) is a free leading-dim split; the swapaxes
    # is one dense relayout copy so every kernel DMA reads/writes 128 dense
    # lanes (the (..., n<128) layout is lane-padded in HBM regardless).
    xt = jnp.swapaxes(x2d.reshape(chunks, _LANES, n), 1, 2)

    out = _argmax_bins_call(xt, n, min_rating, bin_size, block_bytes)
    out_flat = out.reshape(m_pad)
    if m_pad != m:
        out_flat = out_flat[:m]
    return out_flat.reshape(lead_shape)


def _reference(inputs, bin_size=1.0, min_rating=1.0):
    return min_rating + jnp.argmax(inputs, axis=-1).astype(jnp.float32) * bin_size


if __name__ == "__main__":
    k0, k1, k2 = jax.random.split(jax.random.PRNGKey(0), 3)

    # (batch=2, channels=4, spatial=16, bins=16): single-chunk path.
    x = jax.random.normal(k0, (2, 4, 16, 16), dtype=jnp.float32)
    out = jax.block_until_ready(
        beta_bins_mode(x, bin_size=1.0, min_rating=1.0, max_rating=5.0))
    ref = _reference(x, bin_size=1.0, min_rating=1.0)
    assert out.shape == x.shape[:-1], (out.shape, x.shape)
    assert out.dtype == jnp.float32
    assert jnp.array_equal(out, ref), "mismatch vs reference (bins=16)"

    # Non-power-of-two bin count; m = 2048 -> 16 chunks, and a tiny byte
    # budget forces a multi-step pipelined grid.
    x_odd = jax.random.normal(k1, (4, 8, 64, 10), dtype=jnp.float32)
    out_odd = jax.block_until_ready(
        beta_bins_mode(x_odd, bin_size=0.5, min_rating=1.0, max_rating=5.0,
                       block_bytes=64 * 1024))
    ref_odd = _reference(x_odd, bin_size=0.5, min_rating=1.0)
    assert out_odd.shape == x_odd.shape[:-1]
    assert jnp.array_equal(out_odd, ref_odd), "mismatch vs reference (bins=10)"

    # Row count that is not a multiple of 128 exercises the pad-and-slice path.
    x_rag = jax.random.normal(k2, (3, 5, 7), dtype=jnp.float32)
    out_rag = jax.block_until_ready(
        beta_bins_mode(x_rag, bin_size=1.0, min_rating=1.0, max_rating=5.0))
    ref_rag = _reference(x_rag, bin_size=1.0, min_rating=1.0)
    assert out_rag.shape == x_rag.shape[:-1]
    assert jnp.array_equal(out_rag, ref_rag), "mismatch vs reference (ragged m)"

    print("KERNEL_OK")
</pallas_src>

<mosaic_0001>
module attributes {stable_mosaic.version = 11 : i64} {
  func.func @_argmax_bins_kernel(%arg0: i32, %arg1: memref<1x16x128xf32, #tpu.memory_space<vmem>>, %arg2: memref<1x128xf32, #tpu.memory_space<vmem>>) attributes {dimension_semantics = [#tpu.dimension_semantics<parallel>], iteration_bounds = array<i64: 1>, scalar_prefetch = 0 : i64, scratch_operands = 0 : i64, tpu.core_type = #tpu.core_type<tc>, window_params = [{transform_indices = @transform_0, window_bounds = array<i64: 1, 16, 128>}, {transform_indices = @transform_1, window_bounds = array<i64: 1, 128>}]} {
    %c0 = arith.constant 0 : index
    %c0_0 = arith.constant 0 : index
    %c0_1 = arith.constant 0 : index
    %0 = vector.load %arg1[%c0, %c0_0, %c0_1] : memref<1x16x128xf32, #tpu.memory_space<vmem>>, vector<1x16x128xf32>
    %1 = tpu.iota {dimensions = array<i32: 1>} : vector<1x16x128xi32>
    %2 = arith.cmpf one, %0, %0 : vector<1x16x128xf32>
    %cst = arith.constant 0x7F800000 : f32
    %3 = vector.broadcast %cst : f32 to vector<1x16x128xf32>
    %4 = arith.select %2, %3, %0 : vector<1x16x128xi1>, vector<1x16x128xf32>
    %c1048576_i32 = arith.constant 1048576 : i32
    %5 = vector.broadcast %c1048576_i32 : i32 to vector<1x16x128xi32>
    %6 = arith.subi %1, %5 : vector<1x16x128xi32>
    %7 = arith.select %2, %6, %1 : vector<1x16x128xi1>, vector<1x16x128xi32>
    %cst_2 = arith.constant dense<0xFF800000> : vector<1x128xf32>
    %8 = vector.multi_reduction <maximumf>, %4, %cst_2 [1] : vector<1x16x128xf32> to vector<1x128xf32>
    %9 = vector.shape_cast %8 : vector<1x128xf32> to vector<1x1x128xf32>
    %10 = vector.broadcast %9 : vector<1x1x128xf32> to vector<1x16x128xf32>
    %11 = arith.cmpf oeq, %4, %10 : vector<1x16x128xf32>
    %c4194304_i32 = arith.constant 4194304 : i32
    %12 = vector.broadcast %c4194304_i32 : i32 to vector<1x16x128xi32>
    %13 = arith.select %11, %7, %12 : vector<1x16x128xi1>, vector<1x16x128xi32>
    %cst_3 = arith.constant dense<2147483647> : vector<1x128xi32>
    %14 = vector.multi_reduction <minsi>, %13, %cst_3 [1] : vector<1x16x128xi32> to vector<1x128xi32>
    %c0_i32 = arith.constant 0 : i32
    %15 = vector.broadcast %c0_i32 : i32 to vector<1x128xi32>
    %16 = arith.cmpi slt, %14, %15 : vector<1x128xi32>
    %c1048576_i32_4 = arith.constant 1048576 : i32
    %17 = vector.broadcast %c1048576_i32_4 : i32 to vector<1x128xi32>
    %18 = arith.addi %14, %17 : vector<1x128xi32>
    %19 = arith.select %16, %18, %14 : vector<1x128xi1>, vector<1x128xi32>
    %20 = arith.sitofp %19 : vector<1x128xi32> to vector<1x128xf32>
    %cst_5 = arith.constant 1.000000e+00 : f32
    %21 = vector.broadcast %cst_5 : f32 to vector<1x128xf32>
    %22 = arith.mulf %20, %21 : vector<1x128xf32>
    %cst_6 = arith.constant 1.000000e+00 : f32
    %23 = vector.broadcast %cst_6 : f32 to vector<1x128xf32>
    %24 = arith.addf %23, %22 : vector<1x128xf32>
    %c0_7 = arith.constant 0 : index
    %c0_8 = arith.constant 0 : index
    %25 = vector.load %arg2[%c0_7, %c0_8] : memref<1x128xf32, #tpu.memory_space<vmem>>, vector<1x128xf32>
    tpu.vector_store %arg2[%c0_7, %c0_8], %24 {strides = array<i32>} : memref<1x128xf32, #tpu.memory_space<vmem>>, vector<1x128xf32>,
    return
  }
  func.func @transform_0(%arg0: i32) -> (i32, i32, i32) {
    %c0_i32 = arith.constant 0 : i32
    %c0_i32_0 = arith.constant 0 : i32
    %c0_i32_1 = arith.constant 0 : i32
    return %arg0, %c0_i32, %c0_i32_0 : i32, i32, i32
  }
  func.func @transform_1(%arg0: i32) -> (i32, i32) {
    %c0_i32 = arith.constant 0 : i32
    %c0_i32_0 = arith.constant 0 : i32
    return %arg0, %c0_i32 : i32, i32
  }
}

</mosaic_0001>

<bundles_post_ra>
// kernel: tpu_custom_call.1
= control target key start
LH: loop header
LB: loop body
LE: loop exit
PB: predicated region body
PF: predicated region fallthrough
CT: control target
= control target key end

     0   :  { %6 = vsyncpa [#allocation3], 0  ;;  %s171_s0 = inlined_call_operand.hbm [shape: f32[1,16,128], index: 0, kind: input, shape index: {}]   ;;  %s172_s1 = inlined_call_operand.hbm [shape: f32[1,128], index: 1, kind: output, shape index: {}]  }
   0x1   :  { %7 = vsyncpa [#allocation4], 0  ;;  %s133_s6 = smov [#allocation2]   ;;  %s85_s10 = scalar_lea.hbm %s171_s0, 256 }
   0x2   :  { %s13_s7 = sshll.u32 %s133_s6, 4  ;;  %p86_p0 = scmp.ne.s32.totalorder %s171_s0, %s85_s10  ;;  %s14_s7 = int_to_ptr.vmem [resolvable:$true] %s13_s7 }
   0x3   :  { %p89_p1 = scmp.lt.u32.totalorder %s85_s10, %s171_s0 }
   0x5   :  { %p91_p2 = pnand %p89_p1, %p86_p0 }
   0x7   :  { %94 = shalt.err (!%p91_p2)
}
   0x8   :  { %s95_s15 = scalar_lea.vmem %s14_s7, 256  ;;  %p100_p4 = scmp.lt.s32.totalorder %s14_s7, %s14_s7 }
   0x9   :  { %p96_p3 = scmp.ne.s32.totalorder %s14_s7, %s95_s15  ;;  %p101_p5 = scmp.lt.s32.totalorder %s95_s15, %s95_s15 }
   0xb   :  { %p102_p6 = por %p101_p5, %p100_p4 }
   0xd   :  { %p103_p7 = pnand %p102_p6, %p96_p3 }
   0xf   :  { %106 = shalt.err (!%p103_p7)
}
  0x10   :  { %s134_s16 = smov 128   ;;  %s135_s17 = smov 8  }
  0x11   :  { %19 = dma.hbm_to_vmem [thread:$0]  %s171_s0, 256, %s14_s7, [#allocation3], %s134_s16, %s134_s16, %s135_s17  }
  0x12   :  { %129 = dma.done.wait [#allocation3], 256  }
  0x13   :  { %130 = vsyncadd [#allocation3], 4294967040  ;;  %v25_v0 = vlaneseq  ;;  %v23_v1 = vld [vmem:[#allocation2] sm:$0xff]  ;;  %v24_v2 = vld [vmem:[#allocation2 + $0x8] sm:$0xff]  ;;  %s136_s0 = smov [#allocation5]  }
  0x14   :  { %vm28_vm0 = vcmp.ne.f32.partialorder %v23_v1, %v23_v1  ;;  %vm29_vm1 = vcmp.ne.f32.partialorder %v24_v2, %v24_v2  ;;  %s70_s20 = sshll.u32 %s136_s0, 4  ;;  %s71_s20 = int_to_ptr.vmem [resolvable:$true] %s70_s20 }
  0x15   :  { %v30_v3 = vsel %vm28_vm0, inf, %v23_v1  ;;  %v31_v4 = vsel %vm29_vm1, inf, %v24_v2  ;;  %v26_v5 = vshrl.u32 %v25_v0, 7  ;;  %s107_s21 = scalar_lea.vmem %s71_s20, 16  ;;  %s111_s22 = scalar_lea.vmem %s71_s20, 32 }
  0x16   :  { %v36_v6 = vmax.f32 %v30_v3, %v31_v4  ;;  %p108_p8 = scmp.ne.s32.totalorder %s71_s20, %s107_s21  ;;  %p112_p9 = scmp.lt.s32.totalorder %s71_s20, %s71_s20 }
  0x17   :  { %v27_v8 = vadd.s32 8, %v26_v5  ;;  %v79_v11 = vadd.s32 4293918720, %v26_v5  ;;  %p113_p10 = scmp.lt.s32.totalorder %s111_s22, %s107_s21 }
  0x18   :  { %v37_v7 = vrot.slane %v36_v6, 4 }
  0x19   :  { %v80_v12 = vadd.s32 4293918720, %v27_v8  ;;  %v34_v15 = vsel %vm28_vm0, %v79_v11, %v26_v5  ;;  %p114_p11 = por %p113_p10, %p112_p9 }
  0x1a   :  { %v38_v9 = vmax.f32 %v36_v6, %v37_v7 }
  0x1b   :  { %v35_v16 = vsel %vm29_vm1, %v80_v12, %v27_v8  ;;  %p115_p12 = pnand %p114_p11, %p108_p8 }
  0x1c   :  { %v39_v10 = vrot.slane %v38_v9, 2 }
  0x1e   :  { %v40_v13 = vmax.f32 %v38_v9, %v39_v10 }
  0x20   :  { %v41_v14 = vrot.slane %v40_v13, 1 }
  0x22   :  { %v42_v17 = vmax.f32 %v40_v13, %v41_v14 }
  0x24   :  { %vm43_vm2 = vcmp.eq.f32.partialorder %v30_v3, %v42_v17  ;;  %vm44_vm3 = vcmp.eq.f32.partialorder %v31_v4, %v42_v17 }
  0x25   :  { %v45_v18 = vsel %vm43_vm2, %v34_v15, 4194304  ;;  %v46_v19 = vsel %vm44_vm3, %v35_v16, 4194304 }
  0x26   :  { %vm47_vm4 = vcmp.lt.s32.totalorder %v45_v18, %v46_v19 }
  0x27   :  { %v48_v20 = vsel %vm47_vm4, %v45_v18, %v46_v19 }
  0x28   :  { %v49_v21 = vrot.slane %v48_v20, 4 }
  0x2a   :  { %vm50_vm5 = vcmp.lt.s32.totalorder %v48_v20, %v49_v21 }
  0x2b   :  { %v51_v22 = vsel %vm50_vm5, %v48_v20, %v49_v21 }
  0x2c   :  { %v52_v23 = vrot.slane %v51_v22, 2 }
  0x2e   :  { %vm53_vm6 = vcmp.lt.s32.totalorder %v51_v22, %v52_v23 }
  0x2f   :  { %v54_v24 = vsel %vm53_vm6, %v51_v22, %v52_v23 }
  0x30   :  { %v55_v25 = vrot.slane %v54_v24, 1 }
  0x32   :  { %vm56_vm7 = vcmp.lt.s32.totalorder %v54_v24, %v55_v25 }
  0x33   :  { %v57_v26 = vsel %vm56_vm7, %v54_v24, %v55_v25 }
  0x34   :  { %vm58_vm8 = vcmp.lt.s32.totalorder %v57_v26, 0  ;;  %v59_v27 = vadd.s32 1048576, %v57_v26 }
  0x36   :  { %v60_v28 = vsel %vm58_vm8, %v59_v27, %v57_v26 }
  0x37   :  { %v61_v29 = vcvt.s32.f32 %v60_v28 }
  0x39   :  { %v62_v30 = vadd.f32 1.0, %v61_v29 }
  0x3b   :  { %63 = vst [vmem:[#allocation5] sm:$0x1] %v62_v30 }
  0x3c   :  { %118 = shalt.err (!%p115_p12)
}
  0x3d   :  { %s119_s25 = scalar_lea.hbm %s172_s1, 16 }
  0x3e   :  { %p120_p13 = scmp.ne.s32.totalorder %s172_s1, %s119_s25  ;;  %p123_p0 = scmp.lt.u32.totalorder %s119_s25, %s172_s1 }
  0x40   :  { %p125_p1 = pnand %p123_p0, %p120_p13 }
  0x42   :  { %128 = shalt.err (!%p125_p1)
}
  0x43   :  { %73 = dma.vmem_to_hbm [thread:$0]  %s71_s20, 16, %s172_s1, [#allocation4]  }
  0x44   :  { %131 = dma.done.wait [#allocation4], 16  }
  0x45   :  { %132 = vsyncadd [#allocation4], 4294967280 }
  0x46   :  { %77 = vsyncpa [#allocation3], 1 }
  0x47   :  { %78 = vsyncpa [#allocation4], 1 }

</bundles_post_ra>
